<compile_context>
chip_gen: v7x
topology: tpu7x:2x2x1
jax: 0.10.0
libtpu: 0.0.40
codegen_flags: <defaults>
</compile_context>

<pallas_src>
import functools

import jax
import jax.numpy as jnp
from jax.experimental import pallas as pl
from jax.experimental.pallas import tpu as pltpu

_VMEM_LIMIT_BYTES = 64 * 1024 * 1024


def _round_up(x, m):
    return ((x + m - 1) // m) * m


# ----------------------------------------------------------------------------
# Kernel 1: BertPredictionHeadTransform  (dense -> gelu -> layernorm), fused.
# x / w1 are bf16; bias / gamma / beta are f32; output is bf16.
# ----------------------------------------------------------------------------
def _transform_kernel(x_ref, w1_ref, b1_ref, gamma_ref, beta_ref, o_ref, *, eps):
    # bf16 x bf16 matmul with f32 accumulation on the MXU.
    h = jnp.dot(x_ref[...], w1_ref[...], preferred_element_type=jnp.float32)
    h = h + b1_ref[...]                                   # (tm, H) + (1, H)

    # exact (erf-based) GELU, matching transformers ACT2FN["gelu"]
    h = 0.5 * h * (1.0 + jax.lax.erf(h * 0.7071067811865476))

    # LayerNorm over the hidden (last) axis, f32 math.
    mean = jnp.mean(h, axis=-1, keepdims=True)
    centered = h - mean
    var = jnp.mean(centered * centered, axis=-1, keepdims=True)
    h = centered * jax.lax.rsqrt(var + eps) * gamma_ref[...] + beta_ref[...]

    o_ref[...] = h.astype(o_ref.dtype)


def transform_pallas(x2d, w1, b1, gamma, beta, *, eps, tm):
    M, H = x2d.shape
    kernel = functools.partial(_transform_kernel, eps=eps)
    return pl.pallas_call(
        kernel,
        out_shape=jax.ShapeDtypeStruct((M, H), jnp.bfloat16),
        grid_spec=pltpu.PrefetchScalarGridSpec(
            num_scalar_prefetch=0,
            grid=(M // tm,),
            in_specs=[
                pl.BlockSpec((tm, H), lambda i: (i, 0)),   # x tile (bf16)
                pl.BlockSpec((H, H), lambda i: (0, 0)),    # dense weight (in, out) bf16
                pl.BlockSpec((1, H), lambda i: (0, 0)),    # dense bias f32
                pl.BlockSpec((1, H), lambda i: (0, 0)),    # LN gamma f32
                pl.BlockSpec((1, H), lambda i: (0, 0)),    # LN beta f32
            ],
            out_specs=pl.BlockSpec((tm, H), lambda i: (i, 0)),
        ),
        compiler_params=pltpu.CompilerParams(
            dimension_semantics=("parallel",),
            vmem_limit_bytes=_VMEM_LIMIT_BYTES),
    )(x2d, w1, b1, gamma, beta)


# ----------------------------------------------------------------------------
# Kernel 2: decoder  logits = h @ W_dec + bias   (W_dec stored as [H, V])
# h / W_dec are bf16; bias is f32; logits are f32.
# ----------------------------------------------------------------------------
def _decoder_kernel(h_ref, w2_ref, bias_ref, o_ref):
    logits = jnp.dot(h_ref[...], w2_ref[...], preferred_element_type=jnp.float32)
    o_ref[...] = (logits + bias_ref[...]).astype(o_ref.dtype)


def decoder_pallas(h2d, w2, bias, *, tm, tv):
    M, H = h2d.shape
    V = w2.shape[1]
    # Vocab axis is the OUTER grid dim so each (H, tv) weight tile stays
    # VMEM-resident across the inner M loop and is streamed from HBM once.
    return pl.pallas_call(
        _decoder_kernel,
        out_shape=jax.ShapeDtypeStruct((M, V), jnp.float32),
        grid_spec=pltpu.PrefetchScalarGridSpec(
            num_scalar_prefetch=0,
            grid=(V // tv, M // tm),
            in_specs=[
                pl.BlockSpec((tm, H), lambda j, i: (i, 0)),   # transformed hidden (bf16)
                pl.BlockSpec((H, tv), lambda j, i: (0, j)),   # decoder weight (in, out) bf16
                pl.BlockSpec((1, tv), lambda j, i: (0, j)),   # decoder bias f32
            ],
            out_specs=pl.BlockSpec((tm, tv), lambda j, i: (i, j)),
        ),
        compiler_params=pltpu.CompilerParams(
            dimension_semantics=("parallel", "parallel"),
            vmem_limit_bytes=_VMEM_LIMIT_BYTES),
    )(h2d, w2, bias)


# ----------------------------------------------------------------------------
# Wrapper: full BertLMPredictionHead forward.
# ----------------------------------------------------------------------------
def bert_lm_prediction_head(hidden_states, params, *, eps=1e-12, tm=256, tv=1024):
    """hidden_states: [B, S, H] -> logits: [B, S, V] (f32)."""
    B, S, H = hidden_states.shape
    V = params["w_decoder"].shape[1]
    M = B * S

    # Effective tiles: respect (8,128) tiling, shrink for small shapes,
    # pad M / V up to tile multiples (padding sliced off at the end).
    tm_eff = min(tm, _round_up(M, 8))
    tv_eff = min(tv, _round_up(V, 128))
    M_pad = _round_up(M, tm_eff)
    V_pad = _round_up(V, tv_eff)

    x2d = hidden_states.reshape(M, H).astype(jnp.bfloat16)
    if M_pad != M:
        x2d = jnp.pad(x2d, ((0, M_pad - M), (0, 0)))

    w_dense = params["w_dense"].astype(jnp.bfloat16)
    b_dense = params["b_dense"].astype(jnp.float32)
    ln_gamma = params["ln_gamma"].astype(jnp.float32)
    ln_beta = params["ln_beta"].astype(jnp.float32)

    h2d = transform_pallas(x2d, w_dense, b_dense, ln_gamma, ln_beta,
                           eps=eps, tm=tm_eff)

    w_dec = params["w_decoder"].astype(jnp.bfloat16)
    b_dec = params["b_decoder"].astype(jnp.float32)
    if V_pad != V:
        w_dec = jnp.pad(w_dec, ((0, 0), (0, V_pad - V)))
        b_dec = jnp.pad(b_dec, ((0, 0), (0, V_pad - V)))

    logits2d = decoder_pallas(h2d, w_dec, b_dec, tm=tm_eff, tv=tv_eff)
    logits2d = logits2d[:M, :V]
    return logits2d.reshape(B, S, V)


# Pure-JAX f32 reference for sanity checking (kernel uses bf16 operands with
# f32 accumulation, so the comparison tolerance is loosened accordingly).
def _reference(hidden_states, params, eps=1e-12):
    x = hidden_states.astype(jnp.float32)
    h = x @ params["w_dense"] + params["b_dense"][0]
    h = 0.5 * h * (1.0 + jax.lax.erf(h / jnp.sqrt(2.0)))
    mean = jnp.mean(h, axis=-1, keepdims=True)
    var = jnp.mean((h - mean) ** 2, axis=-1, keepdims=True)
    h = (h - mean) * jax.lax.rsqrt(var + eps) * params["ln_gamma"][0] + params["ln_beta"][0]
    return h @ params["w_decoder"] + params["b_decoder"][0]


if __name__ == "__main__":
    # Small config consistent with the module: hidden_size=32, vocab_size=256.
    B, S, H, V = 2, 8, 32, 256
    key = jax.random.PRNGKey(0)
    k1, k2, k3, _ = jax.random.split(key, 4)

    # Deterministic synthetic parameters (no checkpoint loading).
    params = {
        # nn.Linear(H, H): weight [H, H]; stored pre-transposed as [in, out]
        "w_dense": (jax.random.normal(k1, (H, H), jnp.float32) * 0.05),
        "b_dense": jnp.zeros((1, H), jnp.float32) + 0.01,
        # nn.LayerNorm(H)
        "ln_gamma": jnp.ones((1, H), jnp.float32),
        "ln_beta": jnp.zeros((1, H), jnp.float32),
        # nn.Linear(H, V, bias=False) weight [V, H] stored as [H, V]; separate bias param
        "w_decoder": (jax.random.normal(k2, (H, V), jnp.float32) * 0.05),
        "b_decoder": jnp.zeros((1, V), jnp.float32),  # self.bias, zeros as in module
    }

    x = jax.random.normal(k3, (B, S, H), jnp.float32)

    out = bert_lm_prediction_head(x, params)
    out = jax.block_until_ready(out)

    ref = _reference(x, params)
    assert out.shape == (B, S, V)
    # bf16 operands + f32 accumulation -> loosened tolerance vs. f32 reference.
    assert jnp.allclose(out, ref, atol=2e-2, rtol=2e-2), "mismatch vs reference"

    print("KERNEL_OK")
</pallas_src>

<mosaic_0001>
module attributes {stable_mosaic.version = 11 : i64} {
  func.func @_transform_kernel(%arg0: i32, %arg1: memref<16x32xbf16, #tpu.memory_space<vmem>>, %arg2: memref<32x32xbf16, #tpu.memory_space<vmem>>, %arg3: memref<1x32xf32, #tpu.memory_space<vmem>>, %arg4: memref<1x32xf32, #tpu.memory_space<vmem>>, %arg5: memref<1x32xf32, #tpu.memory_space<vmem>>, %arg6: memref<16x32xbf16, #tpu.memory_space<vmem>>) attributes {dimension_semantics = [#tpu.dimension_semantics<parallel>], iteration_bounds = array<i64: 1>, scalar_prefetch = 0 : i64, scratch_operands = 0 : i64, tpu.core_type = #tpu.core_type<tc>, window_params = [{transform_indices = @transform_0, window_bounds = array<i64: 16, 32>}, {pipeline_mode = #tpu.pipeline_mode<synchronous>, transform_indices = @transform_1, window_bounds = array<i64: 32, 32>}, {pipeline_mode = #tpu.pipeline_mode<synchronous>, transform_indices = @transform_2, window_bounds = array<i64: 1, 32>}, {pipeline_mode = #tpu.pipeline_mode<synchronous>, transform_indices = @transform_3, window_bounds = array<i64: 1, 32>}, {pipeline_mode = #tpu.pipeline_mode<synchronous>, transform_indices = @transform_4, window_bounds = array<i64: 1, 32>}, {transform_indices = @transform_5, window_bounds = array<i64: 16, 32>}]} {
    %c0 = arith.constant 0 : index
    %c0_0 = arith.constant 0 : index
    %0 = vector.load %arg1[%c0, %c0_0] : memref<16x32xbf16, #tpu.memory_space<vmem>>, vector<16x32xbf16>
    %c0_1 = arith.constant 0 : index
    %c0_2 = arith.constant 0 : index
    %1 = vector.load %arg2[%c0_1, %c0_2] : memref<32x32xbf16, #tpu.memory_space<vmem>>, vector<32x32xbf16>
    %cst = arith.constant dense<0.000000e+00> : vector<16x32xf32>
    %2 = tpu.matmul %0, %1, %cst {dimension_numbers = #tpu.dot_dimension_numbers<[1], [0], [0], [1], [0, 0, 1, 1], [], []>} : vector<16x32xbf16>, vector<32x32xbf16>, vector<16x32xf32> -> vector<16x32xf32>
    %c0_3 = arith.constant 0 : index
    %c0_4 = arith.constant 0 : index
    %3 = vector.load %arg3[%c0_3, %c0_4] : memref<1x32xf32, #tpu.memory_space<vmem>>, vector<1x32xf32>
    %4 = vector.broadcast %3 : vector<1x32xf32> to vector<16x32xf32>
    %5 = arith.addf %2, %4 : vector<16x32xf32>
    %cst_5 = arith.constant 5.000000e-01 : f32
    %6 = vector.broadcast %cst_5 : f32 to vector<16x32xf32>
    %7 = arith.mulf %6, %5 : vector<16x32xf32>
    %cst_6 = arith.constant 0.707106769 : f32
    %8 = vector.broadcast %cst_6 : f32 to vector<16x32xf32>
    %9 = arith.mulf %5, %8 : vector<16x32xf32>
    %10 = math.erf %9 : vector<16x32xf32>
    %cst_7 = arith.constant 1.000000e+00 : f32
    %11 = vector.broadcast %cst_7 : f32 to vector<16x32xf32>
    %12 = arith.addf %11, %10 : vector<16x32xf32>
    %13 = arith.mulf %7, %12 : vector<16x32xf32>
    %cst_8 = arith.constant dense<0.000000e+00> : vector<16xf32>
    %14 = vector.multi_reduction <add>, %13, %cst_8 [1] : vector<16x32xf32> to vector<16xf32>
    %15 = vector.shape_cast %14 : vector<16xf32> to vector<16x1xf32>
    %cst_9 = arith.constant 3.200000e+01 : f32
    %16 = vector.broadcast %cst_9 : f32 to vector<16x1xf32>
    %17 = arith.divf %15, %16 : vector<16x1xf32>
    %18 = vector.broadcast %17 : vector<16x1xf32> to vector<16x32xf32>
    %19 = arith.subf %13, %18 : vector<16x32xf32>
    %20 = arith.mulf %19, %19 : vector<16x32xf32>
    %cst_10 = arith.constant dense<0.000000e+00> : vector<16xf32>
    %21 = vector.multi_reduction <add>, %20, %cst_10 [1] : vector<16x32xf32> to vector<16xf32>
    %22 = vector.shape_cast %21 : vector<16xf32> to vector<16x1xf32>
    %cst_11 = arith.constant 3.200000e+01 : f32
    %23 = vector.broadcast %cst_11 : f32 to vector<16x1xf32>
    %24 = arith.divf %22, %23 : vector<16x1xf32>
    %cst_12 = arith.constant 9.99999996E-13 : f32
    %25 = vector.broadcast %cst_12 : f32 to vector<16x1xf32>
    %26 = arith.addf %24, %25 : vector<16x1xf32>
    %27 = math.rsqrt %26 : vector<16x1xf32>
    %28 = vector.broadcast %27 : vector<16x1xf32> to vector<16x32xf32>
    %29 = arith.mulf %19, %28 : vector<16x32xf32>
    %c0_13 = arith.constant 0 : index
    %c0_14 = arith.constant 0 : index
    %30 = vector.load %arg4[%c0_13, %c0_14] : memref<1x32xf32, #tpu.memory_space<vmem>>, vector<1x32xf32>
    %31 = vector.broadcast %30 : vector<1x32xf32> to vector<16x32xf32>
    %32 = arith.mulf %29, %31 : vector<16x32xf32>
    %c0_15 = arith.constant 0 : index
    %c0_16 = arith.constant 0 : index
    %33 = vector.load %arg5[%c0_15, %c0_16] : memref<1x32xf32, #tpu.memory_space<vmem>>, vector<1x32xf32>
    %34 = vector.broadcast %33 : vector<1x32xf32> to vector<16x32xf32>
    %35 = arith.addf %32, %34 : vector<16x32xf32>
    %36 = arith.truncf %35 : vector<16x32xf32> to vector<16x32xbf16>
    %c0_17 = arith.constant 0 : index
    %c0_18 = arith.constant 0 : index
    %37 = vector.load %arg6[%c0_17, %c0_18] : memref<16x32xbf16, #tpu.memory_space<vmem>>, vector<16x32xbf16>
    tpu.vector_store %arg6[%c0_17, %c0_18], %36 {strides = array<i32>} : memref<16x32xbf16, #tpu.memory_space<vmem>>, vector<16x32xbf16>,
    return
  }
  func.func @transform_0(%arg0: i32) -> (i32, i32) {
    %c0_i32 = arith.constant 0 : i32
    %c0_i32_0 = arith.constant 0 : i32
    return %arg0, %c0_i32 : i32, i32
  }
  func.func @transform_1(%arg0: i32) -> (i32, i32) {
    %c0_i32 = arith.constant 0 : i32
    %c0_i32_0 = arith.constant 0 : i32
    %c0_i32_1 = arith.constant 0 : i32
    return %c0_i32, %c0_i32_0 : i32, i32
  }
  func.func @transform_2(%arg0: i32) -> (i32, i32) {
    %c0_i32 = arith.constant 0 : i32
    %c0_i32_0 = arith.constant 0 : i32
    %c0_i32_1 = arith.constant 0 : i32
    return %c0_i32, %c0_i32_0 : i32, i32
  }
  func.func @transform_3(%arg0: i32) -> (i32, i32) {
    %c0_i32 = arith.constant 0 : i32
    %c0_i32_0 = arith.constant 0 : i32
    %c0_i32_1 = arith.constant 0 : i32
    return %c0_i32, %c0_i32_0 : i32, i32
  }
  func.func @transform_4(%arg0: i32) -> (i32, i32) {
    %c0_i32 = arith.constant 0 : i32
    %c0_i32_0 = arith.constant 0 : i32
    %c0_i32_1 = arith.constant 0 : i32
    return %c0_i32, %c0_i32_0 : i32, i32
  }
  func.func @transform_5(%arg0: i32) -> (i32, i32) {
    %c0_i32 = arith.constant 0 : i32
    %c0_i32_0 = arith.constant 0 : i32
    return %arg0, %c0_i32 : i32, i32
  }
}

</mosaic_0001>

<bundles_post_ra>
// kernel: tpu_custom_call.1
= control target key start
LH: loop header
LB: loop body
LE: loop exit
PB: predicated region body
PF: predicated region fallthrough
CT: control target
= control target key end

     0   :  { %10 = vsyncpa [#allocation3], 0  ;;  %s561_s0 = inlined_call_operand.hbm [shape: bf16[16,32], index: 0, kind: input, shape index: {}]   ;;  %s562_s1 = inlined_call_operand.hbm [shape: bf16[32,32], index: 1, kind: input, shape index: {}]   ;;  %s563_s2 = inlined_call_operand.hbm [shape: f32[1,32], index: 2, kind: input, shape index: {}]   ;;  %s564_s3 = inlined_call_operand.hbm [shape: f32[1,32], index: 3, kind: input, shape index: {}]   ;;  %s565_s4 = inlined_call_operand.hbm [shape: f32[1,32], index: 4, kind: input, shape index: {}]   ;;  %s566_s5 = inlined_call_operand.hbm [shape: bf16[16,32], index: 5, kind: output, shape index: {}]  }
   0x1   :  { %11 = vsyncpa [#allocation6], 0 }
   0x2   :  { %12 = vsyncpa [#allocation9], 0 }
   0x3   :  { %13 = vsyncpa [#allocation4], 0  ;;  %s427_s18 = smov [#allocation5]   ;;  %s428_s20 = smov [#allocation8]  }
   0x4   :  { %s31_s19 = sshll.u32 %s427_s18, 4  ;;  %s54_s21 = sshll.u32 %s428_s20, 4  ;;  %s32_s19 = int_to_ptr.vmem [resolvable:$true] %s31_s19  ;;  %s467_s21 = int_to_ptr.vmem [resolvable:$true] %s54_s21 }
   0x5   :  { %s287_s24 = scalar_lea.hbm %s562_s1, 256 }
   0x6   :  { %p288_p0 = scmp.ne.s32.totalorder %s562_s1, %s287_s24  ;;  %p291_p1 = scmp.lt.u32.totalorder %s287_s24, %s562_s1 }
   0x8   :  { %p293_p2 = pnand %p291_p1, %p288_p0 }
   0xa   :  { %296 = shalt.err (!%p293_p2)
}
   0xb   :  { %s297_s29 = scalar_lea.vmem %s32_s19, 256  ;;  %p302_p4 = scmp.lt.s32.totalorder %s32_s19, %s32_s19 }
   0xc   :  { %p298_p3 = scmp.ne.s32.totalorder %s32_s19, %s297_s29  ;;  %p303_p5 = scmp.lt.s32.totalorder %s297_s29, %s297_s29 }
   0xe   :  { %p304_p6 = por %p303_p5, %p302_p4 }
  0x10   :  { %p305_p7 = pnand %p304_p6, %p298_p3 }
  0x12   :  { %308 = shalt.err (!%p305_p7)
}
  0x13   :  { %s429_s30 = smov 64   ;;  %s430_s6 = smov 4  }
  0x14   :  { %37 = dma.hbm_to_vmem [thread:$0]  %s562_s1, 256, %s32_s19, [#allocation6], %s429_s30, %s429_s30, %s430_s6  }
  0x15   :  { %s309_s11 = scalar_lea.hbm %s564_s3, 16 }
  0x16   :  { %p310_p8 = scmp.ne.s32.totalorder %s564_s3, %s309_s11  ;;  %p313_p9 = scmp.lt.u32.totalorder %s309_s11, %s564_s3 }
  0x18   :  { %p315_p10 = pnand %p313_p9, %p310_p8 }
  0x1a   :  { %318 = shalt.err (!%p315_p10)
}
  0x1b   :  { %s319_s16 = scalar_lea.vmem %s467_s21, 16  ;;  %s323_s1 = scalar_lea.vmem %s467_s21, 32 }
  0x1c   :  { %p320_p11 = scmp.ne.s32.totalorder %s467_s21, %s319_s16  ;;  %p324_p12 = scmp.lt.s32.totalorder %s467_s21, %s467_s21 }
  0x1d   :  { %p325_p13 = scmp.lt.s32.totalorder %s323_s1, %s319_s16 }
  0x1f   :  { %p326_p0 = por %p325_p13, %p324_p12 }
  0x21   :  { %p327_p1 = pnand %p326_p0, %p320_p11 }
  0x23   :  { %330 = shalt.err (!%p327_p1)
}
  0x24   :  { %57 = dma.hbm_to_vmem [thread:$0]  %s564_s3, 16, %s467_s21, [#allocation9]  }
  0x25   :  { %s431_s19 = smov [#allocation2]   ;;  %s432_s22 = smov [#allocation7]  }
  0x26   :  { %s19_s20 = sshll.u32 %s431_s19, 4  ;;  %s44_s23 = sshll.u32 %s432_s22, 4  ;;  %s20_s20 = int_to_ptr.vmem [resolvable:$true] %s19_s20  ;;  %s45_s23 = int_to_ptr.vmem [resolvable:$true] %s44_s23 }
  0x27   :  { %s331_s26 = scalar_lea.hbm %s561_s0, 128 }
  0x28   :  { %p332_p2 = scmp.ne.s32.totalorder %s561_s0, %s331_s26  ;;  %p335_p3 = scmp.lt.u32.totalorder %s331_s26, %s561_s0 }
  0x2a   :  { %p337_p4 = pnand %p335_p3, %p332_p2 }
  0x2c   :  { %340 = shalt.err (!%p337_p4)
}
  0x2d   :  { %s341_s3 = scalar_lea.vmem %s20_s20, 128  ;;  %p346_p6 = scmp.lt.s32.totalorder %s20_s20, %s20_s20 }
  0x2e   :  { %p342_p5 = scmp.ne.s32.totalorder %s20_s20, %s341_s3  ;;  %p347_p7 = scmp.lt.s32.totalorder %s341_s3, %s341_s3 }
  0x30   :  { %p348_p8 = por %p347_p7, %p346_p6 }
  0x32   :  { %p349_p9 = pnand %p348_p8, %p342_p5 }
  0x34   :  { %352 = shalt.err (!%p349_p9)
}
  0x35   :  { %25 = dma.hbm_to_vmem [thread:$0]  %s561_s0, 128, %s20_s20, [#allocation3], %s429_s30, %s429_s30, %s430_s6  }
  0x36   :  { %s353_s11 = scalar_lea.hbm %s563_s2, 16 }
  0x37   :  { %p354_p10 = scmp.ne.s32.totalorder %s563_s2, %s353_s11  ;;  %p357_p11 = scmp.lt.u32.totalorder %s353_s11, %s563_s2 }
  0x39   :  { %p359_p12 = pnand %p357_p11, %p354_p10 }
  0x3b   :  { %362 = shalt.err (!%p359_p12)
}
  0x3c   :  { %s363_s16 = scalar_lea.vmem %s45_s23, 16  ;;  %s367_s1 = scalar_lea.vmem %s45_s23, 32 }
  0x3d   :  { %p364_p13 = scmp.ne.s32.totalorder %s45_s23, %s363_s16  ;;  %p368_p0 = scmp.lt.s32.totalorder %s45_s23, %s45_s23 }
  0x3e   :  { %p369_p1 = scmp.lt.s32.totalorder %s367_s1, %s363_s16 }
  0x40   :  { %p370_p2 = por %p369_p1, %p368_p0 }
  0x42   :  { %p371_p3 = pnand %p370_p2, %p364_p13 }
  0x44   :  { %374 = shalt.err (!%p371_p3)
}
  0x45   :  { %47 = dma.hbm_to_vmem [thread:$0]  %s563_s2, 16, %s45_s23, [#allocation6]  }
  0x46   :  { %s433_s18 = smov [#allocation10]   ;;  %s375_s24 = scalar_lea.hbm %s565_s4, 16 }
  0x47   :  { %s64_s19 = sshll.u32 %s433_s18, 4  ;;  %p376_p4 = scmp.ne.s32.totalorder %s565_s4, %s375_s24  ;;  %s65_s19 = int_to_ptr.vmem [resolvable:$true] %s64_s19 }
  0x48   :  { %p379_p5 = scmp.lt.u32.totalorder %s375_s24, %s565_s4 }
  0x4a   :  { %p381_p6 = pnand %p379_p5, %p376_p4 }
  0x4c   :  { %384 = shalt.err (!%p381_p6)
}
  0x4d   :  { %s385_s29 = scalar_lea.vmem %s65_s19, 16  ;;  %s389_s2 = scalar_lea.vmem %s65_s19, 32 }
  0x4e   :  { %p386_p7 = scmp.ne.s32.totalorder %s65_s19, %s385_s29  ;;  %p390_p8 = scmp.lt.s32.totalorder %s65_s19, %s65_s19 }
  0x4f   :  { %p391_p9 = scmp.lt.s32.totalorder %s389_s2, %s385_s29 }
  0x51   :  { %p392_p10 = por %p391_p9, %p390_p8 }
  0x53   :  { %p393_p11 = pnand %p392_p10, %p386_p7 }
  0x55   :  { %396 = shalt.err (!%p393_p11)
}
  0x56   :  { %67 = dma.hbm_to_vmem [thread:$0]  %s565_s4, 16, %s65_s19, [#allocation9]  }
  0x57   :  { %419 = dma.done.wait [#allocation3], 128  }
  0x58   :  { %420 = vsyncadd [#allocation3], 4294967168 }
  0x59   :  { %421 = dma.done.wait [#allocation6], 272  }
  0x5a   :  { %422 = vsyncadd [#allocation6], 4294967024 }
  0x5b   :  { %423 = dma.done.wait [#allocation9], 32  }
  0x5c   :  { %424 = vsyncadd [#allocation9], 4294967264  ;;  %v434_v0 = vmov 0.0   ;;  %vm435_vm0 = vmmov 0   ;;  %v276_v1 = vld [vmem:[#allocation5] sm:$0xff]   ;;  %v277_v2 = vld [vmem:[#allocation5 + $0x8] sm:$0xff]  }
  0x5d   :  { %258 = vmatprep.subr.bf16.mxu0 %v434_v0  ;;  %262 = vmatprep.mubr.msk.bf16.mxu0 %vm435_vm0, %v434_v0  ;;  %v278_v3 = vld [vmem:[#allocation2] sm:$0xff]   ;;  %vm114_vm1 = vcmask 261120   ;;  %v244_v4 = vld [vmem:[#allocation7] ss:$0 sm:$0xff]  ;;  %v249_v40 = vld [vmem:[#allocation8] ss:$0 sm:$0xff] }
  0x5e   :  { %259 = vmatpush3.bf16.msra.mxu0 %v276_v1  ;;  %v250_v42 = vld [vmem:[#allocation10] ss:$0 sm:$0xff]  ;;  %vm222_vm2 = vcmask 257024   ;;  %s436_s4 = smov [#allocation11]  }
  0x5f   :  { %260 = vmatprep.subr.bf16.mxu0 %v434_v0  ;;  %s230_s3 = sshll.u32 %s436_s4, 4  ;;  %s231_s3 = int_to_ptr.vmem [resolvable:$true] %s230_s3 }
  0x60   :  { %s397_s21 = scalar_lea.vmem %s231_s3, 128  ;;  %p402_p13 = scmp.lt.s32.totalorder %s231_s3, %s231_s3 }
  0x61   :  { %p398_p12 = scmp.ne.s32.totalorder %s231_s3, %s397_s21  ;;  %p403_p0 = scmp.lt.s32.totalorder %s397_s21, %s397_s21 }
  0x62   :  { %261 = vmatpush3.bf16.msra.mxu0 %v277_v2 }
  0x63   :  { %p404_p1 = por %p403_p0, %p402_p13 }
  0x65   :  { %263 = vmatmul.mubr.msk.bf16.vlgmr.msra.gmra.mrb[0].mxu0 %vm114_vm1, %v278_v3  ;;  %p405_p2 = pnand %p404_p1, %p398_p12 }
 0x138   :  { %v152_v5 = vpop.f32.mrb[0].mxu0 }
 0x139   :  { %v153_v6 = vadd.f32 %v244_v4, %v152_v5  ;;  %v264_v7 = vpop.f32.mrb[1].mxu0 }
 0x13a   :  { %v155_v8 = vpop.f32.mrb[2].mxu0 }
 0x13b   :  { %v161_v9 = vmul.f32 0.70710677, %v153_v6  ;;  %v156_v10 = vadd.f32 %v244_v4, %v155_v8  ;;  %v265_v11 = vpop.f32.mrb[3].mxu0  ;;  %v159_v14 = vmul.f32 0.5, %v153_v6 }
 0x13d   :  { %279 = verf.f32 %v161_v9  ;;  %v162_v12 = vmul.f32 0.70710677, %v156_v10  ;;  %v160_v17 = vmul.f32 0.5, %v156_v10 }
 0x13f   :  { %281 = verf.f32 %v162_v12 }
 0x147   :  { %v280_v13 = vpop.eup %279 }
 0x148   :  { %v165_v15 = vadd.f32 1.0, %v280_v13 }
 0x149   :  { %v282_v16 = vpop.eup %281 }
 0x14a   :  { %v167_v18 = vmul.f32 %v165_v15, %v159_v14  ;;  %v166_v19 = vadd.f32 1.0, %v282_v16 }
 0x14c   :  { %v169_v20 = vsel %vm114_vm1, %v167_v18, 0.0  ;;  %v168_v21 = vmul.f32 %v166_v19, %v160_v17 }
 0x14d   :  { %170 = vadd.xlane.f32.xlu0 %v169_v20 }
 0x14e   :  { %v172_v22 = vsel %vm114_vm1, %v168_v21, 0.0 }
 0x151   :  { %173 = vadd.xlane.f32.xlu0 %v172_v22 }
 0x1da   :  { %v171_v23 = vpop.xlane.xlu0 %170 }
 0x1db   :  { %v176_v24 = vmul.f32 0.03125, %v171_v23 }
 0x1dd   :  { %v178_v25 = vsub.f32 %v167_v18, %v176_v24 }
 0x1de   :  { %v174_v26 = vpop.xlane.xlu0 %173 }
 0x1df   :  { %v177_v27 = vmul.f32 0.03125, %v174_v26  ;;  %v180_v28 = vmul.f32 %v178_v25, %v178_v25 }
 0x1e1   :  { %v179_v29 = vsub.f32 %v168_v21, %v177_v27  ;;  %v182_v30 = vsel %vm114_vm1, %v180_v28, 0.0 }
 0x1e2   :  { %183 = vadd.xlane.f32.xlu1 %v182_v30 }
 0x1e3   :  { %v181_v31 = vmul.f32 %v179_v29, %v179_v29 }
 0x1e5   :  { %v185_v32 = vsel %vm114_vm1, %v181_v31, 0.0 }
 0x1e6   :  { %186 = vadd.xlane.f32.xlu1 %v185_v32 }
 0x26f   :  { %v184_v33 = vpop.xlane.xlu1 %183 }
 0x270   :  { %v188_v34 = vmul.f32 0.03125, %v184_v33 }
 0x272   :  { %v190_v35 = vadd.f32 1e-12, %v188_v34 }
 0x273   :  { %v187_v36 = vpop.xlane.xlu1 %186 }
 0x274   :  { %283 = vrsqrt.f32 %v190_v35  ;;  %v189_v37 = vmul.f32 0.03125, %v187_v36 }
 0x276   :  { %v191_v38 = vadd.f32 1e-12, %v189_v37 }
 0x278   :  { %285 = vrsqrt.f32 %v191_v38 }
 0x27e   :  { %v284_v39 = vpop.eup %283 }
 0x27f   :  { %v194_v41 = vmul.f32 %v284_v39, %v178_v25 }
 0x281   :  { %v203_v43 = vmul.f32 %v249_v40, %v194_v41 }
 0x282   :  { %v286_v44 = vpop.eup %285 }
 0x283   :  { %v195_v45 = vmul.f32 %v286_v44, %v179_v29  ;;  %v212_v46 = vadd.f32 %v250_v42, %v203_v43 }
 0x285   :  { %v204_v47 = vmul.f32 %v249_v40, %v195_v45  ;;  %v253_v48 = vpack.c.bf16 %v212_v46, %v212_v46 }
 0x287   :  { %v213_v49 = vadd.f32 %v250_v42, %v204_v47  ;;  %223 = vst.msk [vmem:[#allocation11] sm:$0xf] %vm222_vm2, %v253_v48 }
 0x289   :  { %v254_v50 = vpack.c.bf16 %v213_v49, %v213_v49 }
 0x28b   :  { %224 = vst.msk [vmem:[#allocation11 + $0x4] sm:$0xf] %vm222_vm2, %v254_v50 }
 0x28c   :  { %408 = shalt.err (!%p405_p2)
}
 0x28d   :  { %s409_s10 = scalar_lea.hbm %s566_s5, 128 }
 0x28e   :  { %p410_p3 = scmp.ne.s32.totalorder %s566_s5, %s409_s10  ;;  %p413_p4 = scmp.lt.u32.totalorder %s409_s10, %s566_s5 }
 0x290   :  { %p415_p5 = pnand %p413_p4, %p410_p3 }
 0x292   :  { %418 = shalt.err (!%p415_p5)
}
 0x293   :  { %236 = dma.vmem_to_hbm [thread:$0]  %s231_s3, 128, %s566_s5, [#allocation4], %s429_s30, %s429_s30, %s430_s6  }
 0x294   :  { %425 = dma.done.wait [#allocation4], 128  }
 0x295   :  { %426 = vsyncadd [#allocation4], 4294967168 }
 0x296   :  { %240 = vsyncpa [#allocation3], 1 }
 0x297   :  { %241 = vsyncpa [#allocation6], 1 }
 0x298   :  { %242 = vsyncpa [#allocation9], 1 }
 0x299   :  { %243 = vsyncpa [#allocation4], 1 }

</bundles_post_ra>
